<compile_context>
chip_gen: v6e
topology: v6e:2x2x1
jax: 0.10.0
libtpu: 0.0.40
codegen_flags: <defaults>
</compile_context>

<pallas_src>
import math

import jax
import jax.numpy as jnp
import numpy as np
from jax.experimental import pallas as pl
from jax.experimental.pallas import tpu as pltpu

# ----------------------------- problem sizes --------------------------------
N_INST = 4            # independent problem instances (forward() calls)
BATCH = 8             # batch per forward() call
X_DIM = 16            # data.x_dim
HIDDEN = 32           # args['hidden_size']
XO_DIM = 4            # data.xo_dim
XC_DIM = 8            # data.xc_dim
EPS = 1e-5            # nn.BatchNorm1d default eps

MAX_INST_PER_STEP = 16   # 16 * BATCH = 128 rows -> full MXU M if N_INST grows

# packed-parameter slab layout (one resident DMA)
SLAB_W = 128
ROW_BN0_G, ROW_BN0_B = 0, 1
ROW_BN1_G, ROW_BN1_B = 2, 3
ROW_B1, ROW_B2, ROW_B3 = 4, 5, 6
W1_ROW = 8                        # W1/W2/W3 blocks start on 8-row boundaries
W2_ROW = W1_ROW + X_DIM           # 24
W3_ROW = W2_ROW + HIDDEN          # 56
K_ROWS = W3_ROW + HIDDEN          # 88


# ------------------------------- kernel -------------------------------------
def _cbf_qp_kernel(x_ref, p_ref, out_ref):
    """One grid step = INST_PER_STEP full forward() calls."""
    inst, batch = x_ref.shape[0], x_ref.shape[1]
    rows = inst * batch
    x = x_ref[...]                                        # (I, B, X_DIM) f32

    # ---- static views into the packed parameter slab (tile-aligned, free) ----
    g0  = p_ref[ROW_BN0_G:ROW_BN0_G + 1, 0:X_DIM]
    be0 = p_ref[ROW_BN0_B:ROW_BN0_B + 1, 0:X_DIM]
    g1  = p_ref[ROW_BN1_G:ROW_BN1_G + 1, 0:HIDDEN]
    be1 = p_ref[ROW_BN1_B:ROW_BN1_B + 1, 0:HIDDEN]
    b1  = p_ref[ROW_B1:ROW_B1 + 1, 0:HIDDEN]
    b2  = p_ref[ROW_B2:ROW_B2 + 1, 0:HIDDEN]
    b3p = p_ref[ROW_B3:ROW_B3 + 1, :]                     # (1, 128), 0 past 32
    w1  = p_ref[W1_ROW:W1_ROW + X_DIM, 0:HIDDEN]          # (16, 32)
    w2  = p_ref[W2_ROW:W2_ROW + HIDDEN, 0:HIDDEN]         # (32, 32)
    w3p = p_ref[W3_ROW:W3_ROW + HIDDEN, :]                # (32, 128), 0 past 32

    inv_b = 1.0 / batch

    # ---- BatchNorm1d(x_dim): per-instance batch stats, two-pass biased var ----
    m0 = jnp.sum(x, axis=1, keepdims=True) * inv_b        # (I, 1, X_DIM)
    d0 = x - m0
    v0 = jnp.sum(d0 * d0, axis=1, keepdims=True) * inv_b
    h = d0 * (jax.lax.rsqrt(v0 + EPS) * g0) + be0         # (I, B, X_DIM)

    # ---- Linear(x_dim, hidden) + ReLU : one dot, M = I*B ----
    h = h.reshape(rows, X_DIM)
    h = jnp.maximum(jnp.dot(h, w1, preferred_element_type=jnp.float32) + b1, 0.0)

    # ---- BatchNorm1d(hidden): per-instance stats ----
    h3 = h.reshape(inst, batch, HIDDEN)
    m1 = jnp.sum(h3, axis=1, keepdims=True) * inv_b
    d1 = h3 - m1
    v1 = jnp.sum(d1 * d1, axis=1, keepdims=True) * inv_b
    h = (d1 * (jax.lax.rsqrt(v1 + EPS) * g1) + be1).reshape(rows, HIDDEN)

    # ---- Linear(hidden, hidden) + ReLU ----
    h = jnp.maximum(jnp.dot(h, w2, preferred_element_type=jnp.float32) + b2, 0.0)

    # ---- Linear(hidden, hidden) -> lane-dense (rows, 128) tile directly ----
    xv_pad = jnp.dot(h, w3p, preferred_element_type=jnp.float32) + b3p
    out_ref[...] = xv_pad.reshape(inst, batch, SLAB_W).astype(out_ref.dtype)


# ------------------------------- wrapper -------------------------------------
def _pick_inst_per_step(n_inst):
    ips = min(n_inst, MAX_INST_PER_STEP)
    while n_inst % ips:
        ips -= 1
    return ips


def cbf_qp_forward(x, param_slab):
    """x: (N_INST, BATCH, x_dim, 1) or (BATCH, x_dim, 1) float32.

    Returns (xv, xc) -- the two inputs the rayen ConstraintModule would take.
    """
    single = (x.ndim == 3)
    if single:
        x = x[None]
    n_inst, batch = x.shape[0], x.shape[1]
    x2d = jnp.squeeze(x, axis=-1)                          # (N, B, x_dim)

    ips = _pick_inst_per_step(n_inst)                      # N_INST=4 -> 1 step
    n_steps = n_inst // ips
    rows = n_inst * batch

    cost = pl.CostEstimate(
        flops=2 * rows * (X_DIM * HIDDEN + HIDDEN * HIDDEN + HIDDEN * SLAB_W),
        transcendentals=n_inst * (X_DIM + HIDDEN),         # per-instance rsqrts
        bytes_accessed=4 * (x2d.size + param_slab.size + rows * SLAB_W),
    )

    out_padded = pl.pallas_call(
        _cbf_qp_kernel,
        grid=(n_steps,),
        out_shape=jax.ShapeDtypeStruct((n_inst, batch, SLAB_W), jnp.float32),
        in_specs=[
            pl.BlockSpec((ips, batch, X_DIM), lambda i: (i, 0, 0)),
            pl.BlockSpec((K_ROWS, SLAB_W), lambda i: (0, 0)),   # resident slab
        ],
        out_specs=pl.BlockSpec((ips, batch, SLAB_W), lambda i: (i, 0, 0)),
        compiler_params=pltpu.CompilerParams(
            dimension_semantics=("parallel",)),            # blocks independent
        cost_estimate=cost,
    )(x2d, param_slab)

    xv = out_padded[..., :HIDDEN]                          # (N, B, hidden)
    xc = x2d[..., XO_DIM:XO_DIM + XC_DIM]                  # plain slice (glue)
    if single:
        xv, xc = xv[0], xc[0]
    return xv, xc


# --------------------------- parameter init ----------------------------------
def init_params(key):
    """Mirrors the PyTorch __init__: kaiming_normal_ on Linear weights,
    default uniform bias, BatchNorm gamma=1 / beta=0."""
    keys = jax.random.split(key, 6)

    def kaiming_normal(k, fan_in, fan_out):
        std = math.sqrt(2.0 / fan_in)
        # PyTorch weight is (out, in); store transposed as (in, out) for x @ W.
        return (jax.random.normal(k, (fan_out, fan_in), jnp.float32) * std).T

    def default_bias(k, fan_in, fan_out):
        bound = 1.0 / math.sqrt(fan_in)
        return jax.random.uniform(k, (1, fan_out), jnp.float32, -bound, bound)

    return {
        "bn0_gamma": jnp.ones((1, X_DIM), jnp.float32),
        "bn0_beta": jnp.zeros((1, X_DIM), jnp.float32),
        "w1": kaiming_normal(keys[0], X_DIM, HIDDEN),
        "b1": default_bias(keys[1], X_DIM, HIDDEN),
        "bn1_gamma": jnp.ones((1, HIDDEN), jnp.float32),
        "bn1_beta": jnp.zeros((1, HIDDEN), jnp.float32),
        "w2": kaiming_normal(keys[2], HIDDEN, HIDDEN),
        "b2": default_bias(keys[3], HIDDEN, HIDDEN),
        "w3": kaiming_normal(keys[4], HIDDEN, HIDDEN),
        "b3": default_bias(keys[5], HIDDEN, HIDDEN),
    }


def pack_param_slab(p):
    """Pack all parameters into one (K_ROWS, 128) f32 slab (single DMA)."""
    slab = np.zeros((K_ROWS, SLAB_W), np.float32)
    slab[ROW_BN0_G, :X_DIM] = np.asarray(p["bn0_gamma"]).reshape(-1)
    slab[ROW_BN0_B, :X_DIM] = np.asarray(p["bn0_beta"]).reshape(-1)
    slab[ROW_BN1_G, :HIDDEN] = np.asarray(p["bn1_gamma"]).reshape(-1)
    slab[ROW_BN1_B, :HIDDEN] = np.asarray(p["bn1_beta"]).reshape(-1)
    slab[ROW_B1, :HIDDEN] = np.asarray(p["b1"]).reshape(-1)
    slab[ROW_B2, :HIDDEN] = np.asarray(p["b2"]).reshape(-1)
    slab[ROW_B3, :HIDDEN] = np.asarray(p["b3"]).reshape(-1)
    slab[W1_ROW:W1_ROW + X_DIM, :HIDDEN] = np.asarray(p["w1"])
    slab[W2_ROW:W2_ROW + HIDDEN, :HIDDEN] = np.asarray(p["w2"])
    slab[W3_ROW:W3_ROW + HIDDEN, :HIDDEN] = np.asarray(p["w3"])
    return jnp.asarray(slab)


# ------------------------- pure-JAX reference --------------------------------
def reference_forward(x, p):
    """x: (N_INST, BATCH, x_dim, 1); vmaps one forward() per instance."""
    def single(xi):
        x2d = jnp.squeeze(xi, axis=-1)

        def bn(h, g, b):
            m = jnp.mean(h, axis=0, keepdims=True)
            v = jnp.mean((h - m) ** 2, axis=0, keepdims=True)
            return (h - m) / jnp.sqrt(v + EPS) * g + b

        h = bn(x2d, p["bn0_gamma"], p["bn0_beta"])
        h = jnp.maximum(h @ p["w1"] + p["b1"], 0.0)
        h = bn(h, p["bn1_gamma"], p["bn1_beta"])
        h = jnp.maximum(h @ p["w2"] + p["b2"], 0.0)
        xv = h @ p["w3"] + p["b3"]
        xc = x2d[:, XO_DIM:XO_DIM + XC_DIM]
        return xv, xc

    return jax.vmap(single)(x)


# --------------------------------- main ---------------------------------------
if __name__ == "__main__":
    key = jax.random.PRNGKey(0)
    k_x, k_p = jax.random.split(key)

    # N_INST independent forward calls, each shaped like the PyTorch module
    # expects: (BATCH, x_dim, 1).
    x = jax.random.normal(k_x, (N_INST, BATCH, X_DIM, 1), jnp.float32)
    params = init_params(k_p)
    slab = pack_param_slab(params)

    xv, xc = jax.jit(cbf_qp_forward)(x, slab)
    jax.block_until_ready((xv, xc))

    xv_ref, xc_ref = reference_forward(x, params)
    assert xv.shape == (N_INST, BATCH, HIDDEN)
    assert xc.shape == (N_INST, BATCH, XC_DIM)
    np.testing.assert_allclose(np.asarray(xv), np.asarray(xv_ref),
                               rtol=1e-4, atol=1e-4)
    np.testing.assert_allclose(np.asarray(xc), np.asarray(xc_ref),
                               rtol=1e-5, atol=1e-5)

    print("KERNEL_OK")
</pallas_src>

<mosaic_0001>
module attributes {stable_mosaic.version = 11 : i64} {
  func.func @_cbf_qp_kernel(%arg0: i32, %arg1: memref<4x8x16xf32, #tpu.memory_space<vmem>>, %arg2: memref<88x128xf32, #tpu.memory_space<vmem>>, %arg3: memref<4x8x128xf32, #tpu.memory_space<vmem>>) attributes {dimension_semantics = [#tpu.dimension_semantics<parallel>], iteration_bounds = array<i64: 1>, scalar_prefetch = 0 : i64, scratch_operands = 0 : i64, tpu.core_type = #tpu.core_type<tc>, window_params = [{transform_indices = @transform_0, window_bounds = array<i64: 4, 8, 16>}, {pipeline_mode = #tpu.pipeline_mode<synchronous>, transform_indices = @transform_1, window_bounds = array<i64: 88, 128>}, {transform_indices = @transform_2, window_bounds = array<i64: 4, 8, 128>}]} {
    %c0 = arith.constant 0 : index
    %c0_0 = arith.constant 0 : index
    %c0_1 = arith.constant 0 : index
    %0 = vector.load %arg1[%c0, %c0_0, %c0_1] : memref<4x8x16xf32, #tpu.memory_space<vmem>>, vector<4x8x16xf32>
    %c0_2 = arith.constant 0 : index
    %c0_3 = arith.constant 0 : index
    %1 = vector.load %arg2[%c0_2, %c0_3] : memref<88x128xf32, #tpu.memory_space<vmem>>, vector<1x16xf32>
    %c1 = arith.constant 1 : index
    %c0_4 = arith.constant 0 : index
    %2 = vector.load %arg2[%c1, %c0_4] : memref<88x128xf32, #tpu.memory_space<vmem>>, vector<1x16xf32>
    %c2 = arith.constant 2 : index
    %c0_5 = arith.constant 0 : index
    %3 = vector.load %arg2[%c2, %c0_5] : memref<88x128xf32, #tpu.memory_space<vmem>>, vector<1x32xf32>
    %c3 = arith.constant 3 : index
    %c0_6 = arith.constant 0 : index
    %4 = vector.load %arg2[%c3, %c0_6] : memref<88x128xf32, #tpu.memory_space<vmem>>, vector<1x32xf32>
    %c4 = arith.constant 4 : index
    %c0_7 = arith.constant 0 : index
    %5 = vector.load %arg2[%c4, %c0_7] : memref<88x128xf32, #tpu.memory_space<vmem>>, vector<1x32xf32>
    %c5 = arith.constant 5 : index
    %c0_8 = arith.constant 0 : index
    %6 = vector.load %arg2[%c5, %c0_8] : memref<88x128xf32, #tpu.memory_space<vmem>>, vector<1x32xf32>
    %c6 = arith.constant 6 : index
    %c0_9 = arith.constant 0 : index
    %7 = vector.load %arg2[%c6, %c0_9] : memref<88x128xf32, #tpu.memory_space<vmem>>, vector<1x128xf32>
    %c8 = arith.constant 8 : index
    %c0_10 = arith.constant 0 : index
    %8 = vector.load %arg2[%c8, %c0_10] : memref<88x128xf32, #tpu.memory_space<vmem>>, vector<16x32xf32>
    %c24 = arith.constant 24 : index
    %c0_11 = arith.constant 0 : index
    %9 = vector.load %arg2[%c24, %c0_11] : memref<88x128xf32, #tpu.memory_space<vmem>>, vector<32x32xf32>
    %c56 = arith.constant 56 : index
    %c0_12 = arith.constant 0 : index
    %10 = vector.load %arg2[%c56, %c0_12] : memref<88x128xf32, #tpu.memory_space<vmem>>, vector<32x128xf32>
    %cst = arith.constant dense<0.000000e+00> : vector<4x16xf32>
    %11 = vector.multi_reduction <add>, %0, %cst [1] : vector<4x8x16xf32> to vector<4x16xf32>
    %12 = vector.shape_cast %11 : vector<4x16xf32> to vector<4x1x16xf32>
    %cst_13 = arith.constant 1.250000e-01 : f32
    %13 = vector.broadcast %cst_13 : f32 to vector<4x1x16xf32>
    %14 = arith.mulf %12, %13 : vector<4x1x16xf32>
    %15 = vector.broadcast %14 : vector<4x1x16xf32> to vector<4x8x16xf32>
    %16 = arith.subf %0, %15 : vector<4x8x16xf32>
    %17 = arith.mulf %16, %16 : vector<4x8x16xf32>
    %cst_14 = arith.constant dense<0.000000e+00> : vector<4x16xf32>
    %18 = vector.multi_reduction <add>, %17, %cst_14 [1] : vector<4x8x16xf32> to vector<4x16xf32>
    %19 = vector.shape_cast %18 : vector<4x16xf32> to vector<4x1x16xf32>
    %cst_15 = arith.constant 1.250000e-01 : f32
    %20 = vector.broadcast %cst_15 : f32 to vector<4x1x16xf32>
    %21 = arith.mulf %19, %20 : vector<4x1x16xf32>
    %cst_16 = arith.constant 9.99999974E-6 : f32
    %22 = vector.broadcast %cst_16 : f32 to vector<4x1x16xf32>
    %23 = arith.addf %21, %22 : vector<4x1x16xf32>
    %24 = math.rsqrt %23 : vector<4x1x16xf32>
    %25 = vector.shape_cast %1 : vector<1x16xf32> to vector<1x1x16xf32>
    %26 = vector.broadcast %25 : vector<1x1x16xf32> to vector<4x1x16xf32>
    %27 = arith.mulf %24, %26 : vector<4x1x16xf32>
    %28 = vector.broadcast %27 : vector<4x1x16xf32> to vector<4x8x16xf32>
    %29 = arith.mulf %16, %28 : vector<4x8x16xf32>
    %30 = vector.shape_cast %2 : vector<1x16xf32> to vector<1x1x16xf32>
    %31 = vector.broadcast %30 : vector<1x1x16xf32> to vector<4x8x16xf32>
    %32 = arith.addf %29, %31 : vector<4x8x16xf32>
    %33 = vector.shape_cast %32 : vector<4x8x16xf32> to vector<32x16xf32>
    %cst_17 = arith.constant dense<0.000000e+00> : vector<32x32xf32>
    %34 = tpu.matmul %33, %8, %cst_17 {dimension_numbers = #tpu.dot_dimension_numbers<[1], [0], [0], [1], [0, 0, 1, 1], [], []>} : vector<32x16xf32>, vector<16x32xf32>, vector<32x32xf32> -> vector<32x32xf32>
    %35 = vector.broadcast %5 : vector<1x32xf32> to vector<32x32xf32>
    %36 = arith.addf %34, %35 : vector<32x32xf32>
    %cst_18 = arith.constant 0.000000e+00 : f32
    %37 = vector.broadcast %cst_18 : f32 to vector<32x32xf32>
    %38 = arith.maximumf %36, %37 : vector<32x32xf32>
    %39 = vector.shape_cast %38 : vector<32x32xf32> to vector<4x8x32xf32>
    %cst_19 = arith.constant dense<0.000000e+00> : vector<4x32xf32>
    %40 = vector.multi_reduction <add>, %39, %cst_19 [1] : vector<4x8x32xf32> to vector<4x32xf32>
    %41 = vector.shape_cast %40 : vector<4x32xf32> to vector<4x1x32xf32>
    %cst_20 = arith.constant 1.250000e-01 : f32
    %42 = vector.broadcast %cst_20 : f32 to vector<4x1x32xf32>
    %43 = arith.mulf %41, %42 : vector<4x1x32xf32>
    %44 = vector.broadcast %43 : vector<4x1x32xf32> to vector<4x8x32xf32>
    %45 = arith.subf %39, %44 : vector<4x8x32xf32>
    %46 = arith.mulf %45, %45 : vector<4x8x32xf32>
    %cst_21 = arith.constant dense<0.000000e+00> : vector<4x32xf32>
    %47 = vector.multi_reduction <add>, %46, %cst_21 [1] : vector<4x8x32xf32> to vector<4x32xf32>
    %48 = vector.shape_cast %47 : vector<4x32xf32> to vector<4x1x32xf32>
    %cst_22 = arith.constant 1.250000e-01 : f32
    %49 = vector.broadcast %cst_22 : f32 to vector<4x1x32xf32>
    %50 = arith.mulf %48, %49 : vector<4x1x32xf32>
    %cst_23 = arith.constant 9.99999974E-6 : f32
    %51 = vector.broadcast %cst_23 : f32 to vector<4x1x32xf32>
    %52 = arith.addf %50, %51 : vector<4x1x32xf32>
    %53 = math.rsqrt %52 : vector<4x1x32xf32>
    %54 = vector.shape_cast %3 : vector<1x32xf32> to vector<1x1x32xf32>
    %55 = vector.broadcast %54 : vector<1x1x32xf32> to vector<4x1x32xf32>
    %56 = arith.mulf %53, %55 : vector<4x1x32xf32>
    %57 = vector.broadcast %56 : vector<4x1x32xf32> to vector<4x8x32xf32>
    %58 = arith.mulf %45, %57 : vector<4x8x32xf32>
    %59 = vector.shape_cast %4 : vector<1x32xf32> to vector<1x1x32xf32>
    %60 = vector.broadcast %59 : vector<1x1x32xf32> to vector<4x8x32xf32>
    %61 = arith.addf %58, %60 : vector<4x8x32xf32>
    %62 = vector.shape_cast %61 : vector<4x8x32xf32> to vector<32x32xf32>
    %cst_24 = arith.constant dense<0.000000e+00> : vector<32x32xf32>
    %63 = tpu.matmul %62, %9, %cst_24 {dimension_numbers = #tpu.dot_dimension_numbers<[1], [0], [0], [1], [0, 0, 1, 1], [], []>} : vector<32x32xf32>, vector<32x32xf32>, vector<32x32xf32> -> vector<32x32xf32>
    %64 = vector.broadcast %6 : vector<1x32xf32> to vector<32x32xf32>
    %65 = arith.addf %63, %64 : vector<32x32xf32>
    %cst_25 = arith.constant 0.000000e+00 : f32
    %66 = vector.broadcast %cst_25 : f32 to vector<32x32xf32>
    %67 = arith.maximumf %65, %66 : vector<32x32xf32>
    %cst_26 = arith.constant dense<0.000000e+00> : vector<32x128xf32>
    %68 = tpu.matmul %67, %10, %cst_26 {dimension_numbers = #tpu.dot_dimension_numbers<[1], [0], [0], [1], [0, 0, 1, 1], [], []>} : vector<32x32xf32>, vector<32x128xf32>, vector<32x128xf32> -> vector<32x128xf32>
    %69 = vector.broadcast %7 : vector<1x128xf32> to vector<32x128xf32>
    %70 = arith.addf %68, %69 : vector<32x128xf32>
    %71 = vector.shape_cast %70 : vector<32x128xf32> to vector<4x8x128xf32>
    %c0_27 = arith.constant 0 : index
    %c0_28 = arith.constant 0 : index
    %c0_29 = arith.constant 0 : index
    %72 = vector.load %arg3[%c0_27, %c0_28, %c0_29] : memref<4x8x128xf32, #tpu.memory_space<vmem>>, vector<4x8x128xf32>
    tpu.vector_store %arg3[%c0_27, %c0_28, %c0_29], %71 {strides = array<i32>} : memref<4x8x128xf32, #tpu.memory_space<vmem>>, vector<4x8x128xf32>,
    return
  }
  func.func @transform_0(%arg0: i32) -> (i32, i32, i32) {
    %c0_i32 = arith.constant 0 : i32
    %c0_i32_0 = arith.constant 0 : i32
    %c0_i32_1 = arith.constant 0 : i32
    return %arg0, %c0_i32, %c0_i32_0 : i32, i32, i32
  }
  func.func @transform_1(%arg0: i32) -> (i32, i32) {
    %c0_i32 = arith.constant 0 : i32
    %c0_i32_0 = arith.constant 0 : i32
    %c0_i32_1 = arith.constant 0 : i32
    return %c0_i32, %c0_i32_0 : i32, i32
  }
  func.func @transform_2(%arg0: i32) -> (i32, i32, i32) {
    %c0_i32 = arith.constant 0 : i32
    %c0_i32_0 = arith.constant 0 : i32
    %c0_i32_1 = arith.constant 0 : i32
    return %arg0, %c0_i32, %c0_i32_0 : i32, i32, i32
  }
}

</mosaic_0001>

<bundles_post_ra>
// kernel: cbf_qp_forward.1
= control target key start
LH: loop header
LB: loop body
LE: loop exit
PB: predicated region body
PF: predicated region fallthrough
CT: control target
= control target key end

     0   :  { %7 = vsyncpa [#allocation3], 0  ;;  %s857_s0 = inlined_call_operand.vmem [shape: f32[4,8,16], index: 0, kind: input, shape index: {}]   ;;  %s858_s1 = inlined_call_operand.hbm [shape: f32[88,128], index: 1, kind: input, shape index: {}]   ;;  %s859_s2 = inlined_call_operand.hbm [shape: f32[4,8,128], index: 2, kind: output, shape index: {}]  }
   0x1   :  { %8 = vsyncpa [#allocation4], 0  ;;  %s746_s9 = smov [#allocation2]  }
   0x2   :  { %s16_s10 = sshll.u32 %s746_s9, 4  ;;  %s17_s10 = int_to_ptr.vmem [resolvable:$true] %s16_s10 }
   0x3   :  { %s710_s11 = scalar_lea.vmem %s17_s10, 1408  ;;  %p715_p1 = scmp.lt.s32.totalorder %s17_s10, %s17_s10 }
   0x4   :  { %p711_p0 = scmp.ne.s32.totalorder %s17_s10, %s710_s11  ;;  %p716_p2 = scmp.lt.s32.totalorder %s710_s11, %s710_s11 }
   0x6   :  { %p717_p3 = por %p716_p2, %p715_p1 }
   0x8   :  { %p718_p4 = pnand %p717_p3, %p711_p0 }
   0xa   :  { %721 = shalt.err (!%p718_p4)
}
   0xb   :  { %s747_s12 = smov 128   ;;  %s748_s13 = smov 8  }
   0xc   :  { %22 = dma.hbm_to_vmem [thread:$0]  %s858_s1, 1408, %s17_s10, [#allocation3], %s747_s12, %s747_s12, %s748_s13  }
   0xd   :  { %742 = dma.done.wait [#allocation3], 1408  }
   0xe   :  { %743 = vsyncadd [#allocation3], 4294965888  ;;  %vm47_vm0 = vcmask 130048   ;;  %v38_v0 = vld [vmem:[#allocation2 + $0x10] sm:$0xff]  ;;  %v37_v1 = vld [vmem:[#allocation2 + $0x8] sm:$0xff]  ;;  %vm265_vm1 = vcmask 261120  }
   0xf   :  { %v26_v2 = vld [vmem:[%s857_s0] sm:$0xff]  ;;  %644 = vmatprep.subr.mxu0 %v38_v0  ;;  %v27_v4 = vld [vmem:[%s857_s0 + $0x8] sm:$0xff]  ;;  %v28_v7 = vld [vmem:[%s857_s0 + $0x10] sm:$0xff] }
  0x10   :  { %v48_v3 = vsel %vm47_vm0, %v26_v2, 0.0  ;;  %645 = vmatpush3.msra.mxu0 %v38_v0  ;;  %v55_v6 = vsel %vm47_vm0, %v27_v4, 0.0  ;;  %v29_v8 = vld [vmem:[%s857_s0 + $0x18] sm:$0xff]  ;;  %v62_v10 = vsel %vm47_vm0, %v28_v7, 0.0  ;;  %s749_s0 = smov [#allocation5]  }
  0x11   :  { %v49_v5 = vrot.slane %v48_v3, 4  ;;  %646 = vmatprep.subr.mxu0 %v37_v1  ;;  %v56_v9 = vrot.slane %v55_v6, 4  ;;  %v69_v11 = vsel %vm47_vm0, %v29_v8, 0.0  ;;  %v63_v13 = vrot.slane %v62_v10, 4  ;;  %s593_s23 = sshll.u32 %s749_s0, 4  ;;  %s594_s23 = int_to_ptr.vmem [resolvable:$true] %s593_s23 }
  0x12   :  { %647 = vmatpush3.msra.mxu0 %v37_v1  ;;  %v70_v14 = vrot.slane %v69_v11, 4  ;;  %s722_s24 = scalar_lea.vmem %s594_s23, 512  ;;  %p727_p6 = scmp.lt.s32.totalorder %s594_s23, %s594_s23 }
  0x13   :  { %v50_v12 = vadd.f32 %v49_v5, %v48_v3  ;;  %v57_v15 = vadd.f32 %v56_v9, %v55_v6  ;;  %v64_v17 = vadd.f32 %v63_v13, %v62_v10  ;;  %p723_p5 = scmp.ne.s32.totalorder %s594_s23, %s722_s24  ;;  %p728_p7 = scmp.lt.s32.totalorder %s722_s24, %s722_s24 }
  0x14   :  { %v71_v18 = vadd.f32 %v70_v14, %v69_v11 }
  0x15   :  { %v51_v16 = vrot.slane %v50_v12, 2  ;;  %v58_v19 = vrot.slane %v57_v15, 2  ;;  %v65_v21 = vrot.slane %v64_v17, 2  ;;  %p729_p8 = por %p728_p7, %p727_p6 }
  0x16   :  { %v72_v22 = vrot.slane %v71_v18, 2 }
  0x17   :  { %v52_v20 = vadd.f32 %v51_v16, %v50_v12  ;;  %v59_v23 = vadd.f32 %v58_v19, %v57_v15  ;;  %v66_v25 = vadd.f32 %v65_v21, %v64_v17  ;;  %p730_p9 = pnand %p729_p8, %p723_p5 }
  0x18   :  { %v73_v26 = vadd.f32 %v72_v22, %v71_v18  ;;  %v132_v18 = vlaneseq }
  0x19   :  { %v53_v24 = vrot.slane %v52_v20, 1  ;;  %v60_v27 = vrot.slane %v59_v23, 1  ;;  %v67_v29 = vrot.slane %v66_v25, 1 }
  0x1a   :  { %v74_v30 = vrot.slane %v73_v26, 1  ;;  %v133_v19 = vshrl.u32 %v132_v18, 7 }
  0x1b   :  { %v54_v28 = vadd.f32 %v53_v24, %v52_v20  ;;  %v61_v31 = vadd.f32 %v60_v27, %v59_v23  ;;  %v68_v33 = vadd.f32 %v67_v29, %v66_v25  ;;  %v30_v20 = vld [vmem:[#allocation2] sm:$0x1] }
  0x1c   :  { %v75_v34 = vadd.f32 %v74_v30, %v73_v26  ;;  %v807_v21 = vsub.s32 0, %v133_v19  ;;  %v605_v30 = vld [vmem:[#allocation2 + $0x1] ss:$0 sm:$0xff] }
  0x1d   :  { %v76_v32 = vmul.f32 0.125, %v54_v28  ;;  %v77_v35 = vmul.f32 0.125, %v61_v31  ;;  %v78_v37 = vmul.f32 0.125, %v68_v33 }
  0x1e   :  { %v79_v38 = vmul.f32 0.125, %v75_v34 }
  0x1f   :  { %v787_v36 = vsub.f32 %v26_v2, %v76_v32  ;;  %v789_v39 = vsub.f32 %v27_v4, %v77_v35  ;;  %v793_v41 = vsub.f32 %v28_v7, %v78_v37 }
  0x20   :  { %v795_v42 = vsub.f32 %v29_v8, %v79_v38 }
  0x21   :  { %v84_v40 = vmul.f32 %v787_v36, %v787_v36  ;;  %v85_v43 = vmul.f32 %v789_v39, %v789_v39  ;;  %v86_v45 = vmul.f32 %v793_v41, %v793_v41 }
  0x22   :  { %v87_v46 = vmul.f32 %v795_v42, %v795_v42 }
  0x23   :  { %v88_v44 = vsel %vm47_vm0, %v84_v40, 0.0  ;;  %v95_v48 = vsel %vm47_vm0, %v85_v43, 0.0  ;;  %v102_v50 = vsel %vm47_vm0, %v86_v45, 0.0 }
  0x24   :  { %v89_v47 = vrot.slane %v88_v44, 4  ;;  %v96_v49 = vrot.slane %v95_v48, 4  ;;  %v109_v51 = vsel %vm47_vm0, %v87_v46, 0.0  ;;  %v103_v53 = vrot.slane %v102_v50, 4 }
  0x25   :  { %v110_v54 = vrot.slane %v109_v51, 4 }
  0x26   :  { %v90_v52 = vadd.f32 %v89_v47, %v88_v44  ;;  %v97_v55 = vadd.f32 %v96_v49, %v95_v48  ;;  %v104_v57 = vadd.f32 %v103_v53, %v102_v50  ;;  %v46_v47 = vld [vmem:[#allocation2 + $0x50] sm:$0xff]  ;;  %v606_v48 = vld [vmem:[#allocation2 + $0x4] ss:$0 sm:$0xff] }
  0x27   :  { %v111_v58 = vadd.f32 %v110_v54, %v109_v51  ;;  %668 = vmatprep.subr.mxu0 %v46_v47 }
  0x28   :  { %v91_v56 = vrot.slane %v90_v52, 2  ;;  %v98_v59 = vrot.slane %v97_v55, 2  ;;  %v105_v61 = vrot.slane %v104_v57, 2 }
  0x29   :  { %v112_v62 = vrot.slane %v111_v58, 2 }
  0x2a   :  { %v92_v60 = vadd.f32 %v91_v56, %v90_v52  ;;  %v99_v63 = vadd.f32 %v98_v59, %v97_v55  ;;  %v106_v1 = vadd.f32 %v105_v61, %v104_v57 }
  0x2b   :  { %v113_v2 = vadd.f32 %v112_v62, %v111_v58 }
  0x2c   :  { %v93_v0 = vrot.slane %v92_v60, 1  ;;  %v100_v3 = vrot.slane %v99_v63, 1  ;;  %v107_v5 = vrot.slane %v106_v1, 1 }
  0x2d   :  { %v114_v6 = vrot.slane %v113_v2, 1 }
  0x2e   :  { %v94_v4 = vadd.f32 %v93_v0, %v92_v60  ;;  %v101_v7 = vadd.f32 %v100_v3, %v99_v63  ;;  %v108_v9 = vadd.f32 %v107_v5, %v106_v1 }
  0x2f   :  { %v115_v10 = vadd.f32 %v114_v6, %v113_v2 }
  0x30   :  { %v116_v8 = vmul.f32 0.125, %v94_v4  ;;  %v117_v11 = vmul.f32 0.125, %v101_v7  ;;  %v118_v13 = vmul.f32 0.125, %v108_v9 }
  0x31   :  { %v119_v14 = vmul.f32 0.125, %v115_v10 }
  0x32   :  { %v120_v12 = vadd.f32 1e-05, %v116_v8  ;;  %v121_v15 = vadd.f32 1e-05, %v117_v11  ;;  %v122_v16 = vadd.f32 1e-05, %v118_v13 }
  0x33   :  { %v123_v17 = vadd.f32 1e-05, %v119_v14 }
  0x34   :  { %686 = vrsqrt.f32 %v120_v12 }
  0x35   :  { %688 = vrsqrt.f32 %v121_v15 }
  0x36   :  { %690 = vrsqrt.f32 %v122_v16 }
  0x37   :  { %692 = vrsqrt.f32 %v123_v17 }
  0x41   :  { %v687_v22 = vpop.eup %686 }
  0x42   :  { %v689_v23 = vpop.eup %688  ;;  %v128_v24 = vmul.f32 %v687_v22, %v30_v20 }
  0x43   :  { %v691_v25 = vpop.eup %690  ;;  %v129_v26 = vmul.f32 %v689_v23, %v30_v20 }
  0x44   :  { %v693_v27 = vpop.eup %692  ;;  %v135_v28 = vrot.slane %v128_v24, %v807_v21  ;;  %v130_v29 = vmul.f32 %v691_v25, %v30_v20 }
  0x45   :  { %v139_v31 = vrot.slane %v129_v26, %v807_v21  ;;  %v131_v32 = vmul.f32 %v693_v27, %v30_v20 }
  0x46   :  { %v148_v33 = vmul.f32 %v135_v28, %v787_v36  ;;  %v143_v34 = vrot.slane %v130_v29, %v807_v21  ;;  %v42_v36 = vld [vmem:[#allocation2 + $0x30] sm:$0xff] }
  0x47   :  { %v149_v35 = vmul.f32 %v139_v31, %v789_v39  ;;  %v147_v37 = vrot.slane %v131_v32, %v807_v21  ;;  %654 = vmatprep.subr.mxu1 %v42_v36  ;;  %v41_v39 = vld [vmem:[#allocation2 + $0x28] sm:$0xff] }
  0x48   :  { %v156_v38 = vadd.f32 %v605_v30, %v148_v33  ;;  %v150_v40 = vmul.f32 %v143_v34, %v793_v41  ;;  %655 = vmatpush3.msra.mxu1 %v42_v36  ;;  %v40_v41 = vld [vmem:[#allocation2 + $0x20] sm:$0xff] }
  0x49   :  { %v157_v43 = vadd.f32 %v605_v30, %v149_v35  ;;  %v151_v44 = vmul.f32 %v147_v37, %v795_v42  ;;  %656 = vmatprep.subr.mxu1 %v41_v39  ;;  %v39_v42 = vld [vmem:[#allocation2 + $0x18] sm:$0xff] }
  0x4a   :  { %648 = vmatprep.mubr.msk.f32.mxu0 %vm47_vm0, %v156_v38  ;;  %v158_v45 = vadd.f32 %v605_v30, %v150_v40  ;;  %657 = vmatpush3.msra.mxu1 %v41_v39 }
  0x4b   :  { %649 = vmatmul.mubr.msk.f32.vlgmr.msra.gmra.mxu0 %vm47_vm0, %v157_v43  ;;  %v159_v46 = vadd.f32 %v605_v30, %v151_v44  ;;  %658 = vmatprep.subr.mxu1 %v40_v41 }
  0x4c   :  { %651 = vmatprep.mubr.msk.f32.mxu0 %vm47_vm0, %v158_v45  ;;  %659 = vmatpush3.msra.mxu1 %v40_v41 }
  0x4d   :  { %660 = vmatprep.subr.mxu1 %v39_v42  ;;  %669 = vmatpush3.msra.mxu0 %v46_v47 }
  0x4e   :  { %661 = vmatpush3.msra.mxu1 %v39_v42 }
  0x4f   :  { %652 = vmatmul.mubr.msk.f32.gmra.mxu0 %vm47_vm0, %v159_v46 }
 0x10b   :  { %v650_v49 = vpop.f32.mrf.mxu0 }
 0x10c   :  { %v248_v50 = vadd.f32 %v650_v49, %v606_v48 }
 0x10d   :  { %v242_v51 = vpop.f32.mrf.mxu0 }
 0x10e   :  { %v262_v52 = vmax.f32 %v248_v50, 0.0  ;;  %v243_v53 = vadd.f32 %v606_v48, %v242_v51 }
 0x10f   :  { %v653_v54 = vpop.f32.mrf.mxu0 }
 0x110   :  { %v273_v55 = vsel %vm265_vm1, %v262_v52, 0.0  ;;  %v261_v56 = vmax.f32 %v243_v53, 0.0  ;;  %v258_v57 = vadd.f32 %v653_v54, %v606_v48 }
 0x111   :  { %v274_v58 = vrot.slane %v273_v55, 4  ;;  %v252_v59 = vpop.f32.mrf.mxu0 }
 0x112   :  { %v266_v60 = vsel %vm265_vm1, %v261_v56, 0.0  ;;  %v264_v61 = vmax.f32 %v258_v57, 0.0  ;;  %v253_v62 = vadd.f32 %v606_v48, %v252_v59 }
 0x113   :  { %v275_v63 = vadd.f32 %v274_v58, %v273_v55  ;;  %v267_v0 = vrot.slane %v266_v60, 4 }
 0x114   :  { %v287_v1 = vsel %vm265_vm1, %v264_v61, 0.0  ;;  %v263_v2 = vmax.f32 %v253_v62, 0.0 }
 0x115   :  { %v276_v3 = vrot.slane %v275_v63, 2  ;;  %v268_v4 = vadd.f32 %v267_v0, %v266_v60  ;;  %v288_v5 = vrot.slane %v287_v1, 4 }
 0x116   :  { %v280_v6 = vsel %vm265_vm1, %v263_v2, 0.0 }
 0x117   :  { %v277_v7 = vadd.f32 %v276_v3, %v275_v63  ;;  %v269_v8 = vrot.slane %v268_v4, 2  ;;  %v289_v9 = vadd.f32 %v288_v5, %v287_v1  ;;  %v281_v10 = vrot.slane %v280_v6, 4 }
 0x119   :  { %v278_v11 = vrot.slane %v277_v7, 1  ;;  %v270_v12 = vadd.f32 %v269_v8, %v268_v4  ;;  %v290_v13 = vrot.slane %v289_v9, 2  ;;  %v282_v14 = vadd.f32 %v281_v10, %v280_v6  ;;  %v32_v10 = vld [vmem:[#allocation2 + $0x2] sm:$0x1] }
 0x11b   :  { %v279_v15 = vadd.f32 %v278_v11, %v277_v7  ;;  %v271_v16 = vrot.slane %v270_v12, 1  ;;  %v291_v17 = vadd.f32 %v290_v13, %v289_v9  ;;  %v283_v18 = vrot.slane %v282_v14, 2 }
 0x11d   :  { %v295_v19 = vmul.f32 0.125, %v279_v15  ;;  %v272_v20 = vadd.f32 %v271_v16, %v270_v12  ;;  %v292_v22 = vrot.slane %v291_v17, 1  ;;  %v284_v23 = vadd.f32 %v283_v18, %v282_v14 }
 0x11f   :  { %v825_v24 = vsub.f32 %v262_v52, %v295_v19  ;;  %v294_v25 = vmul.f32 0.125, %v272_v20  ;;  %v293_v26 = vadd.f32 %v292_v22, %v291_v17  ;;  %v285_v27 = vrot.slane %v284_v23, 1 }
 0x121   :  { %v303_v28 = vmul.f32 %v825_v24, %v825_v24  ;;  %v829_v29 = vsub.f32 %v261_v56, %v294_v25  ;;  %v297_v30 = vmul.f32 0.125, %v293_v26  ;;  %v286_v31 = vadd.f32 %v285_v27, %v284_v23  ;;  %v611_v25 = vld [vmem:[#allocation2 + $0x3] ss:$0 sm:$0xff] }
 0x123   :  { %v313_v32 = vsel %vm265_vm1, %v303_v28, 0.0  ;;  %v302_v33 = vmul.f32 %v829_v29, %v829_v29  ;;  %v301_v34 = vsub.f32 %v264_v61, %v297_v30  ;;  %v296_v35 = vmul.f32 0.125, %v286_v31 }
 0x124   :  { %v314_v37 = vrot.slane %v313_v32, 4 }
 0x125   :  { %v306_v38 = vsel %vm265_vm1, %v302_v33, 0.0  ;;  %v305_v40 = vmul.f32 %v301_v34, %v301_v34  ;;  %v300_v43 = vsub.f32 %v263_v2, %v296_v35 }
 0x126   :  { %v315_v44 = vadd.f32 %v314_v37, %v313_v32  ;;  %v307_v45 = vrot.slane %v306_v38, 4 }
 0x127   :  { %v327_v46 = vsel %vm265_vm1, %v305_v40, 0.0  ;;  %v304_v36 = vmul.f32 %v300_v43, %v300_v43 }
 0x128   :  { %v316_v39 = vrot.slane %v315_v44, 2  ;;  %v308_v41 = vadd.f32 %v307_v45, %v306_v38  ;;  %v328_v42 = vrot.slane %v327_v46, 4 }
 0x129   :  { %v320_v47 = vsel %vm265_vm1, %v304_v36, 0.0 }
 0x12a   :  { %v317_v48 = vadd.f32 %v316_v39, %v315_v44  ;;  %v309_v49 = vrot.slane %v308_v41, 2  ;;  %v329_v50 = vadd.f32 %v328_v42, %v327_v46  ;;  %v321_v51 = vrot.slane %v320_v47, 4 }
 0x12c   :  { %v318_v52 = vrot.slane %v317_v48, 1  ;;  %v310_v53 = vadd.f32 %v309_v49, %v308_v41  ;;  %v330_v54 = vrot.slane %v329_v50, 2  ;;  %v322_v55 = vadd.f32 %v321_v51, %v320_v47 }
 0x12e   :  { %v319_v56 = vadd.f32 %v318_v52, %v317_v48  ;;  %v311_v57 = vrot.slane %v310_v53, 1  ;;  %v331_v58 = vadd.f32 %v330_v54, %v329_v50  ;;  %v323_v59 = vrot.slane %v322_v55, 2  ;;  %v617_v48 = vld [vmem:[#allocation2 + $0x6] ss:$0 sm:$0xff] }
 0x130   :  { %v335_v60 = vmul.f32 0.125, %v319_v56  ;;  %v312_v61 = vadd.f32 %v311_v57, %v310_v53  ;;  %v332_v62 = vrot.slane %v331_v58, 1  ;;  %v324_v63 = vadd.f32 %v323_v59, %v322_v55 }
 0x132   :  { %v339_v0 = vadd.f32 1e-05, %v335_v60  ;;  %v334_v1 = vmul.f32 0.125, %v312_v61  ;;  %v333_v2 = vadd.f32 %v332_v62, %v331_v58  ;;  %v325_v3 = vrot.slane %v324_v63, 1 }
 0x134   :  { %694 = vrsqrt.f32 %v339_v0  ;;  %v338_v4 = vadd.f32 1e-05, %v334_v1  ;;  %v337_v5 = vmul.f32 0.125, %v333_v2  ;;  %v326_v6 = vadd.f32 %v325_v3, %v324_v63 }
 0x136   :  { %696 = vrsqrt.f32 %v338_v4  ;;  %v341_v7 = vadd.f32 1e-05, %v337_v5  ;;  %v336_v8 = vmul.f32 0.125, %v326_v6 }
 0x138   :  { %698 = vrsqrt.f32 %v341_v7  ;;  %v340_v9 = vadd.f32 1e-05, %v336_v8 }
 0x13a   :  { %700 = vrsqrt.f32 %v340_v9 }
 0x141   :  { %v695_v11 = vpop.eup %694 }
 0x142   :  { %v347_v12 = vmul.f32 %v695_v11, %v32_v10 }
 0x143   :  { %v697_v13 = vpop.eup %696 }
 0x144   :  { %v357_v14 = vrot.slane %v347_v12, %v807_v21  ;;  %v346_v15 = vmul.f32 %v697_v13, %v32_v10 }
 0x145   :  { %v699_v16 = vpop.eup %698 }
 0x146   :  { %v349_v17 = vmul.f32 %v699_v16, %v32_v10  ;;  %v353_v18 = vrot.slane %v346_v15, %v807_v21  ;;  %v367_v20 = vmul.f32 %v357_v14, %v825_v24  ;;  %v45_v24 = vld [vmem:[#allocation2 + $0x48] sm:$0xff] }
 0x147   :  { %v701_v19 = vpop.eup %700  ;;  %670 = vmatprep.subr.mxu0 %v45_v24 }
 0x148   :  { %v365_v22 = vrot.slane %v349_v17, %v807_v21  ;;  %v348_v23 = vmul.f32 %v701_v19, %v32_v10  ;;  %v366_v26 = vmul.f32 %v353_v18, %v829_v29  ;;  %v375_v31 = vadd.f32 %v611_v25, %v367_v20  ;;  %671 = vmatpush3.msra.mxu0 %v45_v24  ;;  %v44_v29 = vld [vmem:[#allocation2 + $0x40] sm:$0xff] }
 0x149   :  { %672 = vmatprep.subr.mxu0 %v44_v29 }
 0x14a   :  { %v361_v27 = vrot.slane %v348_v23, %v807_v21  ;;  %v374_v28 = vadd.f32 %v611_v25, %v366_v26  ;;  %v369_v30 = vmul.f32 %v365_v22, %v301_v34  ;;  %673 = vmatpush3.msra.mxu0 %v44_v29  ;;  %v43_v21 = vld [vmem:[#allocation2 + $0x38] sm:$0xff]  ;;  %v612_v34 = vld [vmem:[#allocation2 + $0x5] ss:$0 sm:$0xff] }
 0x14b   :  { %674 = vmatprep.subr.mxu0 %v43_v21 }
 0x14c   :  { %v368_v32 = vmul.f32 %v361_v27, %v300_v43  ;;  %662 = vmatprep.mubr.msk.f32.mxu1 %vm265_vm1, %v374_v28  ;;  %v377_v35 = vadd.f32 %v611_v25, %v369_v30  ;;  %675 = vmatpush3.msra.mxu0 %v43_v21 }
 0x14d   :  { %663 = vmatmul.mubr.msk.f32.vlgmr.msra.gmra.mxu1 %vm265_vm1, %v375_v31 }
 0x14e   :  { %v376_v33 = vadd.f32 %v611_v25, %v368_v32 }
 0x150   :  { %665 = vmatprep.mubr.msk.f32.mxu1 %vm265_vm1, %v376_v33 }
 0x151   :  { %666 = vmatmul.mubr.msk.f32.gmra.mxu1 %vm265_vm1, %v377_v35 }
 0x20d   :  { %v664_v37 = vpop.f32.mrf.mxu1 }
 0x20e   :  { %v466_v38 = vadd.f32 %v664_v37, %v612_v34 }
 0x20f   :  { %v460_v40 = vpop.f32.mrf.mxu1 }
 0x210   :  { %v461_v43 = vadd.f32 %v612_v34, %v460_v40  ;;  %v480_v46 = vmax.f32 %v466_v38, 0.0 }
 0x211   :  { %v667_v44 = vpop.f32.mrf.mxu1 }
 0x212   :  { %v479_v45 = vmax.f32 %v461_v43, 0.0  ;;  %v476_v36 = vadd.f32 %v667_v44, %v612_v34 }
 0x213   :  { %v470_v39 = vpop.f32.mrf.mxu1 }
 0x214   :  { %v471_v41 = vadd.f32 %v612_v34, %v470_v39  ;;  %676 = vmatprep.mubr.msk.f32.mxu0 %vm265_vm1, %v479_v45  ;;  %v482_v47 = vmax.f32 %v476_v36, 0.0 }
 0x215   :  { %677 = vmatmul.mubr.msk.f32.vlgmr.msra.gmra.mxu0 %vm265_vm1, %v480_v46 }
 0x216   :  { %v481_v42 = vmax.f32 %v471_v41, 0.0 }
 0x218   :  { %679 = vmatprep.mubr.msk.f32.mxu0 %vm265_vm1, %v481_v42 }
 0x219   :  { %680 = vmatmul.mubr.msk.f32.gmra.mxu0 %vm265_vm1, %v482_v47 }
 0x2d5   :  { %v678_v49 = vpop.f32.mrf.mxu0 }
 0x2d6   :  { %v571_v50 = vadd.f32 %v678_v49, %v617_v48 }
 0x2d7   :  { %v565_v51 = vpop.f32.mrf.mxu0 }
 0x2d8   :  { %585 = vst [vmem:[#allocation5 + $0x8] sm:$0xff] %v571_v50  ;;  %v566_v52 = vadd.f32 %v617_v48, %v565_v51 }
 0x2d9   :  { %v681_v53 = vpop.f32.mrf.mxu0 }
 0x2da   :  { %584 = vst [vmem:[#allocation5] sm:$0xff] %v566_v52  ;;  %v581_v54 = vadd.f32 %v681_v53, %v617_v48 }
 0x2db   :  { %v575_v55 = vpop.f32.mrf.mxu0 }
 0x2dc   :  { %587 = vst [vmem:[#allocation5 + $0x18] sm:$0xff] %v581_v54  ;;  %v576_v56 = vadd.f32 %v617_v48, %v575_v55 }
 0x2de   :  { %586 = vst [vmem:[#allocation5 + $0x10] sm:$0xff] %v576_v56 }
 0x2df   :  { %733 = shalt.err (!%p730_p9)
}
 0x2e0   :  { %599 = dma.vmem_to_hbm [thread:$0]  %s594_s23, 512, %s859_s2, [#allocation4], %s747_s12, %s747_s12, %s748_s13  }
 0x2e1   :  { %744 = dma.done.wait [#allocation4], 512  }
 0x2e2   :  { %745 = vsyncadd [#allocation4], 4294966784 }
 0x2e3   :  { %603 = vsyncpa [#allocation3], 1 }
 0x2e4   :  { %604 = vsyncpa [#allocation4], 1 }

</bundles_post_ra>
